<compile_context>
chip_gen: v7x
topology: tpu7x:2x2x1
jax: 0.10.0
libtpu: 0.0.40
codegen_flags: <defaults>
</compile_context>

<pallas_src>
import functools
import math

import jax
import jax.numpy as jnp
from jax.experimental import pallas as pl
from jax.experimental.pallas import tpu as pltpu


# ---------------------------------------------------------------------------
# Helpers
# ---------------------------------------------------------------------------
# Conservative scoped-VMEM limit, safe on v5e/v6e/v7x; every block below is tiny.
# TODO(synk): raise to ~64-96 MiB on v5e/v6e once resolutions grow.
_VMEM_LIMIT = 32 * 1024 * 1024


def _round_up(x, m):
    return ((x + m - 1) // m) * m


def _largest_tile(padded, candidates):
    for c in candidates:
        if padded % c == 0:
            return c
    return padded


# ---------------------------------------------------------------------------
# Tiled, pipelined matmul kernel (bf16 MXU inputs, f32 accumulate, fused bias)
# ---------------------------------------------------------------------------
def _matmul_kernel(a_ref, b_ref, bias_ref, o_ref, acc_ref):
    k = pl.program_id(2)

    @pl.when(k == 0)
    def _():
        acc_ref[...] = jnp.zeros_like(acc_ref)

    acc_ref[...] += jnp.dot(a_ref[...], b_ref[...],
                            preferred_element_type=jnp.float32)

    @pl.when(k == pl.num_programs(2) - 1)
    def _():
        o_ref[...] = (acc_ref[...] + bias_ref[...]).astype(o_ref.dtype)


def pallas_matmul(a, b_prepadded, bias_prepadded, n_real, out_dtype=jnp.bfloat16):
    """(M,K) @ (Kp,Np) + bias.  Weights/bias are pre-padded bf16/f32 (done at init)."""
    M, K = a.shape
    Kp, Np = b_prepadded.shape

    Mp = _round_up(M, 128)                         # never 16-row LHS tiles
    tm = _largest_tile(Mp, (512, 256, 128))
    tk = _largest_tile(Kp, (1024, 512, 256, 128))
    tn = _largest_tile(Np, (512, 256, 128))

    a_p = a.astype(jnp.bfloat16)                   # no-op if activations already bf16
    if (Mp, Kp) != (M, K):
        a_p = jnp.pad(a_p, ((0, Mp - M), (0, Kp - K)))

    grid = (Mp // tm, Np // tn, Kp // tk)
    out = pl.pallas_call(
        _matmul_kernel,
        out_shape=jax.ShapeDtypeStruct((Mp, Np), out_dtype),
        grid_spec=pltpu.PrefetchScalarGridSpec(
            num_scalar_prefetch=0,
            grid=grid,
            in_specs=[pl.BlockSpec((tm, tk), lambda i, j, k: (i, k)),
                      pl.BlockSpec((tk, tn), lambda i, j, k: (k, j)),
                      pl.BlockSpec((1, tn), lambda i, j, k: (0, j))],
            out_specs=pl.BlockSpec((tm, tn), lambda i, j, k: (i, j)),
            scratch_shapes=[pltpu.VMEM((tm, tn), jnp.float32)]),
        compiler_params=pltpu.CompilerParams(
            dimension_semantics=("parallel", "parallel", "arbitrary"),
            vmem_limit_bytes=_VMEM_LIMIT),
    )(a_p, b_prepadded, bias_prepadded)
    return out[:M, :n_real]


# ---------------------------------------------------------------------------
# Direct 3x3 convolution kernel: per-batch grid, 9 taps gathered in VMEM
# (no 9x im2col blow-up in HBM).
# ---------------------------------------------------------------------------
def _conv3x3_kernel(x_ref, w_ref, b_ref, o_ref, *, H, W):
    # x_ref: (1, H+2, W+2, C) bf16 spatially pre-padded image block
    # w_ref: (9*C, O) bf16, rows ordered (di, dj, c)
    # b_ref: (1, O)  f32
    # o_ref: (1, H, W, O) bf16
    w = w_ref[...]
    bias = b_ref[...]
    for h in range(H):                       # static unroll; H is small per level
        taps = []
        for di in range(3):
            for dj in range(3):
                taps.append(x_ref[0, h + di, dj:dj + W, :])
        a = jnp.concatenate(taps, axis=-1)                        # (W, 9*C) in VMEM only
        acc = jnp.dot(a, w, preferred_element_type=jnp.float32)   # (W, O) on the MXU
        o_ref[0, h] = (acc + bias).astype(o_ref.dtype)


def conv3x3(x, p):
    """3x3 conv, padding=1, NHWC bf16 activations.  Weights prepared at init."""
    B, H, W, C = x.shape
    O = p["n"]
    # TODO(synk): fold the spatial zero-pad into the kernel's input DMA.
    xp = jnp.pad(x.astype(jnp.bfloat16), ((0, 0), (1, 1), (1, 1), (0, 0)))
    kern = functools.partial(_conv3x3_kernel, H=H, W=W)
    return pl.pallas_call(
        kern,
        out_shape=jax.ShapeDtypeStruct((B, H, W, O), jnp.bfloat16),
        grid_spec=pltpu.PrefetchScalarGridSpec(
            num_scalar_prefetch=0,
            grid=(B,),
            in_specs=[pl.BlockSpec((1, H + 2, W + 2, C), lambda b: (b, 0, 0, 0)),
                      pl.BlockSpec((9 * C, O), lambda b: (0, 0)),
                      pl.BlockSpec((1, O), lambda b: (0, 0))],
            out_specs=pl.BlockSpec((1, H, W, O), lambda b: (b, 0, 0, 0))),
        compiler_params=pltpu.CompilerParams(
            dimension_semantics=("parallel",),
            vmem_limit_bytes=_VMEM_LIMIT),
    )(xp, p["w"], p["b"])
    # TODO(synk): tile over output rows (grid over H) for large images on v7x.


def conv1x1(x, p):
    B, H, W, C = x.shape
    a = x.reshape(B * H * W, C)
    out = pallas_matmul(a, p["w"], p["b"], n_real=p["n"])
    return out.reshape(B, H, W, p["n"])


# ---------------------------------------------------------------------------
# Fused GroupNorm (+ FiLM scale/shift + SiLU) kernel; bf16 in/out, f32 math.
# ---------------------------------------------------------------------------
def _gn_kernel(x_ref, g_ref, b_ref, sc_ref, sh_ref, cg_ref, gc_ref, o_ref, *,
               inv_n, eps, act):
    x = x_ref[0].astype(jnp.float32)             # (L, C), lanes = channels
    cg = cg_ref[...]                             # (C, Gp) channel->group map
    gc = gc_ref[...]                             # (Gp, C) group->channel map
    s = jnp.sum(x, axis=0, keepdims=True)                                  # (1, C)
    mean = jnp.dot(jnp.dot(s, cg, preferred_element_type=jnp.float32), gc,
                   preferred_element_type=jnp.float32) * inv_n             # (1, C)
    d = x - mean
    s2 = jnp.sum(d * d, axis=0, keepdims=True)
    var = jnp.dot(jnp.dot(s2, cg, preferred_element_type=jnp.float32), gc,
                  preferred_element_type=jnp.float32) * inv_n
    xn = d * jax.lax.rsqrt(var + eps)
    xn = xn * g_ref[0] + b_ref[0]
    xn = xn * (sc_ref[0] + 1.0) + sh_ref[0]      # FiLM (identity if zeros)
    if act == "silu":
        xn = xn * jax.nn.sigmoid(xn)
    o_ref[0] = xn.astype(o_ref.dtype)


def group_norm(x, p, scale=None, shift=None, act=None, eps=1e-5):
    # x: (B, H, W, C) NHWC bf16
    B, H, W, C = x.shape
    L = H * W
    xr = x.reshape(B, L, C)
    cg_size = C // p["groups"]
    inv_n = 1.0 / float(L * cg_size)

    if scale is None:
        sc = jnp.zeros((B, 1, C), jnp.float32)
        sh = jnp.zeros((B, 1, C), jnp.float32)
    else:
        sc = scale.reshape(B, 1, C).astype(jnp.float32)
        sh = shift.reshape(B, 1, C).astype(jnp.float32)

    kern = functools.partial(_gn_kernel, inv_n=inv_n, eps=eps, act=act)
    out = pl.pallas_call(
        kern,
        out_shape=jax.ShapeDtypeStruct((B, L, C), jnp.bfloat16),
        grid_spec=pltpu.PrefetchScalarGridSpec(
            num_scalar_prefetch=0,
            grid=(B,),
            in_specs=[pl.BlockSpec((1, L, C), lambda i: (i, 0, 0)),
                      pl.BlockSpec((1, 1, C), lambda i: (0, 0, 0)),
                      pl.BlockSpec((1, 1, C), lambda i: (0, 0, 0)),
                      pl.BlockSpec((1, 1, C), lambda i: (i, 0, 0)),
                      pl.BlockSpec((1, 1, C), lambda i: (i, 0, 0)),
                      pl.BlockSpec(p["cg"].shape, lambda i: (0, 0)),
                      pl.BlockSpec(p["gc"].shape, lambda i: (0, 0))],
            out_specs=pl.BlockSpec((1, L, C), lambda i: (i, 0, 0))),
        compiler_params=pltpu.CompilerParams(
            dimension_semantics=("parallel",),
            vmem_limit_bytes=_VMEM_LIMIT),
    )(xr, p["g"], p["b"], sc, sh, p["cg"], p["gc"])
    # TODO(synk): tile L (two-pass stats) for large resolutions on v7x.
    return out.reshape(B, H, W, C)


# ---------------------------------------------------------------------------
# Attention kernels: all heads per grid step, lane-dense (n, 128) output block
# ---------------------------------------------------------------------------
def _attention_kernel(qkv_ref, o_ref, *, scale, heads, dim_head, hid):
    for hh in range(heads):
        q = qkv_ref[0, :, hh * dim_head:(hh + 1) * dim_head].astype(jnp.float32) * scale
        k = qkv_ref[0, :, hid + hh * dim_head:hid + (hh + 1) * dim_head]
        v = qkv_ref[0, :, 2 * hid + hh * dim_head:2 * hid + (hh + 1) * dim_head]
        sim = jax.lax.dot_general(
            q.astype(jnp.bfloat16), k,
            (((1,), (1,)), ((), ())), preferred_element_type=jnp.float32)   # (n, n)
        sim = sim - jnp.max(sim, axis=-1, keepdims=True)
        e = jnp.exp(sim)
        p = e * pl.reciprocal(jnp.sum(e, axis=-1, keepdims=True), approx=True)
        out = jnp.dot(p.astype(jnp.bfloat16), v, preferred_element_type=jnp.float32)
        o_ref[0, :, hh * dim_head:(hh + 1) * dim_head] = out.astype(o_ref.dtype)
    # TODO(synk): flash-style KV tiling (online softmax) for large n on v7x.


def _linear_attention_kernel(qkv_ref, o_ref, *, scale, heads, dim_head, hid):
    for hh in range(heads):
        q = qkv_ref[0, :, hh * dim_head:(hh + 1) * dim_head].astype(jnp.float32)
        k = qkv_ref[0, :, hid + hh * dim_head:hid + (hh + 1) * dim_head].astype(jnp.float32)
        v = qkv_ref[0, :, 2 * hid + hh * dim_head:2 * hid + (hh + 1) * dim_head]
        # q softmax over feature dim, k softmax over sequence dim (matches PyTorch)
        q = jnp.exp(q - jnp.max(q, axis=-1, keepdims=True))
        q = q * pl.reciprocal(jnp.sum(q, axis=-1, keepdims=True), approx=True)
        k = jnp.exp(k - jnp.max(k, axis=0, keepdims=True))
        k = k * pl.reciprocal(jnp.sum(k, axis=0, keepdims=True), approx=True)
        q = q * scale
        context = jax.lax.dot_general(
            k.astype(jnp.bfloat16), v,
            (((0,), (0,)), ((), ())), preferred_element_type=jnp.float32)   # (d, d)
        out = jnp.dot(q.astype(jnp.bfloat16), context.astype(jnp.bfloat16),
                      preferred_element_type=jnp.float32)                   # (n, d)
        o_ref[0, :, hh * dim_head:(hh + 1) * dim_head] = out.astype(o_ref.dtype)


def _run_attn(kernel, qkv, n, hid):
    B = qkv.shape[0]
    return pl.pallas_call(
        kernel,
        out_shape=jax.ShapeDtypeStruct((B, n, hid), jnp.bfloat16),
        grid_spec=pltpu.PrefetchScalarGridSpec(
            num_scalar_prefetch=0,
            grid=(B,),
            in_specs=[pl.BlockSpec((1, n, 3 * hid), lambda i: (i, 0, 0))],
            out_specs=pl.BlockSpec((1, n, hid), lambda i: (i, 0, 0))),
        compiler_params=pltpu.CompilerParams(
            dimension_semantics=("parallel",),
            vmem_limit_bytes=_VMEM_LIMIT),
    )(qkv)


# ---------------------------------------------------------------------------
# Module forwards (glue = reshapes / pads; compute in kernels). NHWC, bf16.
# ---------------------------------------------------------------------------
def linear_small(x, p):
    # TODO(synk): tiny (M = batch) linears deliberately bypass Pallas (review).
    return jnp.dot(x, p["w"]) + p["b"]


def block_forward(p, x, scale_shift=None):
    x = conv3x3(x, p["conv"])                       # weight-standardized at init
    scale = shift = None
    if scale_shift is not None:
        scale, shift = scale_shift
    return group_norm(x, p["gn"], scale=scale, shift=shift, act="silu")


def resnet_block_forward(p, x, t):
    scale_shift = None
    if p.get("mlp") is not None and t is not None:
        temb = t * jax.nn.sigmoid(t)                # SiLU on the time embedding
        temb = linear_small(temb, p["mlp"])
        scale, shift = jnp.split(temb, 2, axis=1)
        scale_shift = (scale, shift)
    h = block_forward(p["block1"], x, scale_shift)
    h = block_forward(p["block2"], h)
    if p.get("res_conv") is not None:
        res = conv1x1(x, p["res_conv"])
    else:
        res = x
    return h + res


def attention_forward(p, x, heads=4, dim_head=32):
    B, H, W, C = x.shape
    n = H * W
    hid = heads * dim_head
    qkv = conv1x1(x, p["to_qkv"]).reshape(B, n, 3 * hid)
    kern = functools.partial(_attention_kernel, scale=dim_head ** (-0.5),
                             heads=heads, dim_head=dim_head, hid=hid)
    out = _run_attn(kern, qkv, n, hid).reshape(B, H, W, hid)
    return conv1x1(out, p["to_out"])


def linear_attention_forward(p, x, heads=4, dim_head=32):
    B, H, W, C = x.shape
    n = H * W
    hid = heads * dim_head
    qkv = conv1x1(x, p["to_qkv"]).reshape(B, n, 3 * hid)
    kern = functools.partial(_linear_attention_kernel, scale=dim_head ** (-0.5),
                             heads=heads, dim_head=dim_head, hid=hid)
    out = _run_attn(kern, qkv, n, hid).reshape(B, H, W, hid)
    out = conv1x1(out, p["to_out_conv"])
    return group_norm(out, p["to_out_gn"])


def prenorm_residual_attn(p, x, attn_fn):
    xn = group_norm(x, p["norm"])
    return attn_fn(p["attn"], xn) + x


def downsample_forward(p, x):
    # TODO(synk): fold the space-to-depth rearrange into the conv's index_map.
    B, H, W, C = x.shape
    x = (x.reshape(B, H // 2, 2, W // 2, 2, C)
          .transpose(0, 1, 3, 5, 2, 4)
          .reshape(B, H // 2, W // 2, C * 4))
    return conv1x1(x, p["conv"])


def upsample_forward(p, x):
    # TODO(synk): fold the nearest-2x gather into the conv kernel's input DMA.
    x = jnp.repeat(jnp.repeat(x, 2, axis=1), 2, axis=2)
    return conv3x3(x, p["conv"])


def sinusoidal_pos_emb(time, dim):
    half = dim // 2
    freqs = jnp.exp(jnp.arange(half, dtype=jnp.float32) * (-math.log(10000.0) / (half - 1)))
    emb = time.astype(jnp.float32)[:, None] * freqs[None, :]
    return jnp.concatenate([jnp.sin(emb), jnp.cos(emb)], axis=-1)


def time_mlp_forward(p, time, dim):
    t = sinusoidal_pos_emb(time, dim)
    t = linear_small(t, p["lin1"])
    t = jax.nn.gelu(t, approximate=False)
    return linear_small(t, p["lin2"])


def unet_forward(params, x_nchw, time, cfg):
    x = jnp.transpose(x_nchw, (0, 2, 3, 1)).astype(jnp.bfloat16)   # single NCHW->NHWC
    x = conv1x1(x, params["init_conv"])
    r = x
    t = time_mlp_forward(params["time_mlp"], time, cfg["dim"])

    hs = []
    for lvl in params["downs"]:
        x = resnet_block_forward(lvl["block1"], x, t)
        hs.append(x)
        x = resnet_block_forward(lvl["block2"], x, t)
        x = prenorm_residual_attn(lvl["attn"], x, linear_attention_forward)
        hs.append(x)
        if lvl["is_last"]:
            x = conv3x3(x, lvl["downsample"]["conv"])
        else:
            x = downsample_forward(lvl["downsample"], x)

    x = resnet_block_forward(params["mid_block1"], x, t)
    x = prenorm_residual_attn(params["mid_attn"], x, attention_forward)
    x = resnet_block_forward(params["mid_block2"], x, t)

    for lvl in params["ups"]:
        x = jnp.concatenate([x, hs.pop()], axis=-1)
        x = resnet_block_forward(lvl["block1"], x, t)
        x = jnp.concatenate([x, hs.pop()], axis=-1)
        x = resnet_block_forward(lvl["block2"], x, t)
        x = prenorm_residual_attn(lvl["attn"], x, linear_attention_forward)
        if lvl["is_last"]:
            x = conv3x3(x, lvl["upsample"]["conv"])
        else:
            x = upsample_forward(lvl["upsample"], x)

    x = jnp.concatenate([x, r], axis=-1)
    x = resnet_block_forward(params["final_res_block"], x, t)
    x = conv1x1(x, params["final_conv"])
    return jnp.transpose(x, (0, 3, 1, 2)).astype(jnp.float32)      # back to NCHW, f32


# ---------------------------------------------------------------------------
# Deterministic parameter initialization with ONE-TIME weight preparation
# (weight standardization, transpose to (K, N), lane padding, bf16 cast).
# ---------------------------------------------------------------------------
class KeyGen:
    def __init__(self, seed):
        self.key = jax.random.PRNGKey(seed)

    def __call__(self):
        self.key, sub = jax.random.split(self.key)
        return sub


def _prep_conv1x1(kg, o, c, bias=True):
    w = jax.random.normal(kg(), (o, c), jnp.float32) / math.sqrt(c)
    b = (jax.random.normal(kg(), (o,), jnp.float32) * 0.01) if bias \
        else jnp.zeros((o,), jnp.float32)
    kp, np_ = _round_up(c, 128), _round_up(o, 128)
    wm = jnp.pad(w.T, ((0, kp - c), (0, np_ - o))).astype(jnp.bfloat16)
    bp = jnp.pad(b.reshape(1, o), ((0, 0), (0, np_ - o))).astype(jnp.float32)
    return {"w": wm, "b": bp, "n": o}


def _prep_conv3x3(kg, o, c, ws=False):
    w = jax.random.normal(kg(), (o, c, 3, 3), jnp.float32) / math.sqrt(9 * c)
    b = jax.random.normal(kg(), (o,), jnp.float32) * 0.01
    if ws:  # WeightStandardizedConv2d folded into the one-time weight prep
        mean = jnp.mean(w, axis=(1, 2, 3), keepdims=True)
        var = jnp.mean((w - mean) ** 2, axis=(1, 2, 3), keepdims=True)
        w = (w - mean) * jax.lax.rsqrt(var + 1e-5)
    wm = jnp.transpose(w, (2, 3, 1, 0)).reshape(9 * c, o).astype(jnp.bfloat16)
    return {"w": wm, "b": b.reshape(1, o).astype(jnp.float32), "n": o}


def _prep_linear(kg, i, o):
    w = jax.random.normal(kg(), (o, i), jnp.float32) / math.sqrt(i)
    b = jax.random.normal(kg(), (o,), jnp.float32) * 0.01
    return {"w": w.T, "b": b}


def _prep_gn(c, groups):
    gp = max(groups, 8)
    gid = jnp.arange(c) // (c // groups)
    cg = (gid[:, None] == jnp.arange(gp)[None, :]).astype(jnp.float32)   # (C, Gp)
    return {"g": jnp.ones((1, 1, c), jnp.float32),
            "b": jnp.zeros((1, 1, c), jnp.float32),
            "cg": cg, "gc": cg.T, "groups": groups}


def init_unet_params(kg, dim, channels, dim_mults, groups, heads=4, dim_head=32):
    init_dim = dim
    time_dim = dim * 4
    dims = [init_dim] + [dim * m for m in dim_mults]
    in_out = list(zip(dims[:-1], dims[1:]))
    hid = heads * dim_head

    def block_p(din, dout):
        return {"conv": _prep_conv3x3(kg, dout, din, ws=True),
                "gn": _prep_gn(dout, groups)}

    def resnet_p(din, dout):
        return {"mlp": _prep_linear(kg, time_dim, dout * 2),
                "block1": block_p(din, dout),
                "block2": block_p(dout, dout),
                "res_conv": _prep_conv1x1(kg, dout, din) if din != dout else None}

    def linattn_p(d):
        return {"to_qkv": _prep_conv1x1(kg, hid * 3, d, bias=False),
                "to_out_conv": _prep_conv1x1(kg, d, hid),
                "to_out_gn": _prep_gn(d, 1)}

    def attn_p(d):
        return {"to_qkv": _prep_conv1x1(kg, hid * 3, d, bias=False),
                "to_out": _prep_conv1x1(kg, d, hid)}

    params = {
        "init_conv": _prep_conv1x1(kg, init_dim, channels),
        "time_mlp": {"lin1": _prep_linear(kg, dim, time_dim),
                     "lin2": _prep_linear(kg, time_dim, time_dim)},
        "downs": [],
        "ups": [],
    }
    n = len(in_out)
    for ind, (din, dout) in enumerate(in_out):
        is_last = ind >= n - 1
        lvl = {"block1": resnet_p(din, din),
               "block2": resnet_p(din, din),
               "attn": {"norm": _prep_gn(din, 1), "attn": linattn_p(din)},
               "is_last": is_last}
        lvl["downsample"] = {"conv": _prep_conv3x3(kg, dout, din) if is_last
                             else _prep_conv1x1(kg, dout, din * 4)}
        params["downs"].append(lvl)

    mid = dims[-1]
    params["mid_block1"] = resnet_p(mid, mid)
    params["mid_attn"] = {"norm": _prep_gn(mid, 1), "attn": attn_p(mid)}
    params["mid_block2"] = resnet_p(mid, mid)

    for ind, (din, dout) in enumerate(reversed(in_out)):
        is_last = ind == n - 1
        lvl = {"block1": resnet_p(dout + din, dout),
               "block2": resnet_p(dout + din, dout),
               "attn": {"norm": _prep_gn(dout, 1), "attn": linattn_p(dout)},
               "is_last": is_last}
        lvl["upsample"] = {"conv": _prep_conv3x3(kg, din, dout)}
        params["ups"].append(lvl)

    params["final_res_block"] = resnet_p(dim * 2, dim)
    params["final_conv"] = _prep_conv1x1(kg, channels, dim)
    return params


# ---------------------------------------------------------------------------
if __name__ == "__main__":
    cfg = {"dim": 8, "channels": 3, "dim_mults": (1, 2, 4, 8), "groups": 4}

    kg = KeyGen(42)
    params = init_unet_params(kg, cfg["dim"], cfg["channels"],
                              cfg["dim_mults"], cfg["groups"])

    key = jax.random.PRNGKey(0)
    kx, kt = jax.random.split(key)
    x = jax.random.normal(kx, (2, 3, 16, 16), jnp.float32)
    time = jax.random.uniform(kt, (2,), jnp.float32, 0.0, 1000.0)

    out = unet_forward(params, x, time, cfg)
    out = jax.block_until_ready(out)

    assert out.shape == (2, 3, 16, 16), out.shape
    assert bool(jnp.all(jnp.isfinite(out)))
    print("KERNEL_OK")
</pallas_src>

<mosaic_0001>
module attributes {stable_mosaic.version = 11 : i64} {
  func.func @_matmul_kernel(%arg0: i32, %arg1: i32, %arg2: i32, %arg3: memref<512x128xbf16, #tpu.memory_space<vmem>>, %arg4: memref<128x128xbf16, #tpu.memory_space<vmem>>, %arg5: memref<1x128xf32, #tpu.memory_space<vmem>>, %arg6: memref<512x128xbf16, #tpu.memory_space<vmem>>, %arg7: memref<512x128xf32, #tpu.memory_space<vmem>>) attributes {dimension_semantics = [#tpu.dimension_semantics<parallel>, #tpu.dimension_semantics<parallel>, #tpu.dimension_semantics<arbitrary>], iteration_bounds = array<i64: 1, 1, 1>, scalar_prefetch = 0 : i64, scratch_operands = 1 : i64, tpu.core_type = #tpu.core_type<tc>, window_params = [{transform_indices = @transform_0, window_bounds = array<i64: 512, 128>}, {transform_indices = @transform_1, window_bounds = array<i64: 128, 128>}, {transform_indices = @transform_2, window_bounds = array<i64: 1, 128>}, {transform_indices = @transform_3, window_bounds = array<i64: 512, 128>}]} {
    %c0_i32 = arith.constant 0 : i32
    %0 = arith.cmpi eq, %arg2, %c0_i32 : i32
    %1 = arith.extui %0 : i1 to i32
    %c0_i32_0 = arith.constant 0 : i32
    %2 = arith.cmpi ne, %1, %c0_i32_0 : i32
    scf.if %2 {
      %cst_10 = arith.constant 0.000000e+00 : f32
      %12 = vector.broadcast %cst_10 : f32 to vector<512x128xf32>
      %c0_11 = arith.constant 0 : index
      %c0_12 = arith.constant 0 : index
      %13 = vector.load %arg7[%c0_11, %c0_12] : memref<512x128xf32, #tpu.memory_space<vmem>>, vector<512x128xf32>
      tpu.vector_store %arg7[%c0_11, %c0_12], %12 {strides = array<i32>} : memref<512x128xf32, #tpu.memory_space<vmem>>, vector<512x128xf32>,
    } else {
    }
    %c0 = arith.constant 0 : index
    %c0_1 = arith.constant 0 : index
    %3 = vector.load %arg7[%c0, %c0_1] : memref<512x128xf32, #tpu.memory_space<vmem>>, vector<512x128xf32>
    %c0_2 = arith.constant 0 : index
    %c0_3 = arith.constant 0 : index
    %4 = vector.load %arg3[%c0_2, %c0_3] : memref<512x128xbf16, #tpu.memory_space<vmem>>, vector<512x128xbf16>
    %c0_4 = arith.constant 0 : index
    %c0_5 = arith.constant 0 : index
    %5 = vector.load %arg4[%c0_4, %c0_5] : memref<128x128xbf16, #tpu.memory_space<vmem>>, vector<128x128xbf16>
    %cst = arith.constant dense<0.000000e+00> : vector<512x128xf32>
    %6 = tpu.matmul %4, %5, %cst {dimension_numbers = #tpu.dot_dimension_numbers<[1], [0], [0], [1], [0, 0, 1, 1], [], []>} : vector<512x128xbf16>, vector<128x128xbf16>, vector<512x128xf32> -> vector<512x128xf32>
    %7 = arith.addf %3, %6 : vector<512x128xf32>
    %c0_6 = arith.constant 0 : index
    %c0_7 = arith.constant 0 : index
    %8 = vector.load %arg7[%c0_6, %c0_7] : memref<512x128xf32, #tpu.memory_space<vmem>>, vector<512x128xf32>
    tpu.vector_store %arg7[%c0_6, %c0_7], %7 {strides = array<i32>} : memref<512x128xf32, #tpu.memory_space<vmem>>, vector<512x128xf32>,
    %c0_i32_8 = arith.constant 0 : i32
    %9 = arith.cmpi eq, %arg2, %c0_i32_8 : i32
    %10 = arith.extui %9 : i1 to i32
    %c0_i32_9 = arith.constant 0 : i32
    %11 = arith.cmpi ne, %10, %c0_i32_9 : i32
    scf.if %11 {
      %c0_10 = arith.constant 0 : index
      %c0_11 = arith.constant 0 : index
      %12 = vector.load %arg7[%c0_10, %c0_11] : memref<512x128xf32, #tpu.memory_space<vmem>>, vector<512x128xf32>
      %c0_12 = arith.constant 0 : index
      %c0_13 = arith.constant 0 : index
      %13 = vector.load %arg5[%c0_12, %c0_13] : memref<1x128xf32, #tpu.memory_space<vmem>>, vector<1x128xf32>
      %14 = vector.broadcast %13 : vector<1x128xf32> to vector<512x128xf32>
      %15 = arith.addf %12, %14 : vector<512x128xf32>
      %16 = arith.truncf %15 : vector<512x128xf32> to vector<512x128xbf16>
      %c0_14 = arith.constant 0 : index
      %c0_15 = arith.constant 0 : index
      %17 = vector.load %arg6[%c0_14, %c0_15] : memref<512x128xbf16, #tpu.memory_space<vmem>>, vector<512x128xbf16>
      tpu.vector_store %arg6[%c0_14, %c0_15], %16 {strides = array<i32>} : memref<512x128xbf16, #tpu.memory_space<vmem>>, vector<512x128xbf16>,
    } else {
    }
    return
  }
  func.func @transform_0(%arg0: i32, %arg1: i32, %arg2: i32) -> (i32, i32) {
    %c0_i32 = arith.constant 0 : i32
    return %arg0, %arg2 : i32, i32
  }
  func.func @transform_1(%arg0: i32, %arg1: i32, %arg2: i32) -> (i32, i32) {
    %c0_i32 = arith.constant 0 : i32
    return %arg2, %arg1 : i32, i32
  }
  func.func @transform_2(%arg0: i32, %arg1: i32, %arg2: i32) -> (i32, i32) {
    %c0_i32 = arith.constant 0 : i32
    %c0_i32_0 = arith.constant 0 : i32
    return %c0_i32, %arg1 : i32, i32
  }
  func.func @transform_3(%arg0: i32, %arg1: i32, %arg2: i32) -> (i32, i32) {
    %c0_i32 = arith.constant 0 : i32
    return %arg0, %arg1 : i32, i32
  }
}

</mosaic_0001>

<bundles_post_ra>
// kernel: tpu_custom_call.1
= control target key start
LH: loop header
LB: loop body
LE: loop exit
PB: predicated region body
PF: predicated region fallthrough
CT: control target
= control target key end

     0   :  { %8 = vsyncpa [#allocation4], 0  ;;  %s2141_s0 = inlined_call_operand.hbm [shape: bf16[512,128], index: 0, kind: input, shape index: {}]   ;;  %s2142_s1 = inlined_call_operand.hbm [shape: bf16[128,128], index: 1, kind: input, shape index: {}]   ;;  %s2143_s2 = inlined_call_operand.vmem [shape: f32[1,128], index: 2, kind: input, shape index: {}]   ;;  %s2144_s3 = inlined_call_operand.hbm [shape: bf16[512,128], index: 3, kind: output, shape index: {}]  }
   0x1   :  { %9 = vsyncpa [#allocation7], 0 }
   0x2   :  { %10 = vsyncpa [#allocation5], 0  ;;  %s2002_s12 = smov [#allocation3]   ;;  %s1930_s16 = scalar_lea.hbm %s2141_s0, 4096 }
   0x3   :  { %s16_s13 = sshll.u32 %s2002_s12, 4  ;;  %p1931_p0 = scmp.ne.s32.totalorder %s2141_s0, %s1930_s16  ;;  %s17_s13 = int_to_ptr.vmem [resolvable:$true] %s16_s13 }
   0x4   :  { %p1934_p1 = scmp.lt.u32.totalorder %s1930_s16, %s2141_s0 }
   0x6   :  { %p1936_p2 = pnand %p1934_p1, %p1931_p0 }
   0x8   :  { %1939 = shalt.err (!%p1936_p2)
}
   0x9   :  { %s1940_s21 = scalar_lea.vmem %s17_s13, 4096  ;;  %p1945_p4 = scmp.lt.s32.totalorder %s17_s13, %s17_s13 }
   0xa   :  { %p1941_p3 = scmp.ne.s32.totalorder %s17_s13, %s1940_s21  ;;  %p1946_p5 = scmp.lt.s32.totalorder %s1940_s21, %s1940_s21 }
   0xc   :  { %p1947_p6 = por %p1946_p5, %p1945_p4 }
   0xe   :  { %p1948_p7 = pnand %p1947_p6, %p1941_p3 }
  0x10   :  { %1951 = shalt.err (!%p1948_p7)
}
  0x11   :  { %s2003_s22 = smov 64   ;;  %s2004_s23 = smov 4  }
  0x12   :  { %22 = dma.hbm_to_vmem [thread:$0]  %s2141_s0, 4096, %s17_s13, [#allocation4], %s2003_s22, %s2003_s22, %s2004_s23  }
  0x13   :  { %s2005_s26 = smov [#allocation6]   ;;  %s1952_s30 = scalar_lea.hbm %s2142_s1, 1024 }
  0x14   :  { %s28_s27 = sshll.u32 %s2005_s26, 4  ;;  %p1953_p8 = scmp.ne.s32.totalorder %s2142_s1, %s1952_s30  ;;  %s29_s27 = int_to_ptr.vmem [resolvable:$true] %s28_s27 }
  0x15   :  { %p1956_p9 = scmp.lt.u32.totalorder %s1952_s30, %s2142_s1 }
  0x17   :  { %p1958_p10 = pnand %p1956_p9, %p1953_p8 }
  0x19   :  { %1961 = shalt.err (!%p1958_p10)
}
  0x1a   :  { %s1962_s8 = scalar_lea.vmem %s29_s27, 1024  ;;  %p1967_p12 = scmp.lt.s32.totalorder %s29_s27, %s29_s27 }
  0x1b   :  { %p1963_p11 = scmp.ne.s32.totalorder %s29_s27, %s1962_s8  ;;  %p1968_p13 = scmp.lt.s32.totalorder %s1962_s8, %s1962_s8 }
  0x1d   :  { %p1969_p0 = por %p1968_p13, %p1967_p12 }
  0x1f   :  { %p1970_p1 = pnand %p1969_p0, %p1963_p11 }
  0x21   :  { %1973 = shalt.err (!%p1970_p1)
}
  0x22   :  { %34 = dma.hbm_to_vmem [thread:$0]  %s2142_s1, 1024, %s29_s27, [#allocation7], %s2003_s22, %s2003_s22, %s2004_s23  }
  0x23   :  { %1996 = dma.done.wait [#allocation4], 4096  }
  0x24   :  { %1997 = vsyncadd [#allocation4], 4294963200 }
  0x25   :  { %1998 = dma.done.wait [#allocation7], 1024  }
  0x26   :  { %1999 = vsyncadd [#allocation7], 4294966272  ;;  %v1890_v0 = vld [vmem:[#allocation6] sm:$0xff]   ;;  %v1891_v1 = vld [vmem:[#allocation6 + $0x8] sm:$0xff]  }
  0x27   :  { %1789 = vmatprep.subr.bf16.mxu0 %v1890_v0  ;;  %1869 = vmatprep.subr.bf16.mxu1 %v1890_v0  ;;  %v1892_v2 = vld [vmem:[#allocation6 + $0x10] sm:$0xff]   ;;  %v1893_v3 = vld [vmem:[#allocation6 + $0x18] sm:$0xff]   ;;  %v1898_v4 = vld [vmem:[#allocation3] sm:$0xff]  }
  0x28   :  { %1790 = vmatpush3.bf16.msra.mxu0 %v1890_v0  ;;  %1877 = vmatpush3.bf16.msra.mxu1 %v1890_v0  ;;  %v1899_v5 = vld [vmem:[#allocation3 + $0x80] sm:$0xff]   ;;  %v1895_v7 = vld [vmem:[#allocation6 + $0x28] sm:$0xff]   ;;  %v1896_v8 = vld [vmem:[#allocation6 + $0x30] sm:$0xff]  }
  0x29   :  { %1791 = vmatprep.subr.bf16.mxu0 %v1891_v1  ;;  %1870 = vmatprep.subr.bf16.mxu1 %v1891_v1  ;;  %v1894_v6 = vld [vmem:[#allocation6 + $0x20] sm:$0xff]   ;;  %v1897_v9 = vld [vmem:[#allocation6 + $0x38] sm:$0xff]   ;;  %v1900_v10 = vld [vmem:[#allocation3 + $0x8] sm:$0xff]  }
  0x2a   :  { %1805 = vmatprep.mubr.bf16.mxu0 %v1898_v4  ;;  %1837 = vmatprep.mubr.bf16.mxu1 %v1899_v5  ;;  %v1901_v11 = vld [vmem:[#allocation3 + $0x88] sm:$0xff]   ;;  %v1902_v12 = vld [vmem:[#allocation3 + $0x10] sm:$0xff]   ;;  %v1904_v14 = vld [vmem:[#allocation3 + $0x18] sm:$0xff]  }
  0x2b   :  { %v1903_v13 = vld [vmem:[#allocation3 + $0x90] sm:$0xff]   ;;  %v1905_v15 = vld [vmem:[#allocation3 + $0x98] sm:$0xff]   ;;  %v1906_v16 = vld [vmem:[#allocation3 + $0x20] sm:$0xff]  }
  0x2c   :  { %1792 = vmatpush3.bf16.msra.mxu0 %v1891_v1  ;;  %1878 = vmatpush3.bf16.msra.mxu1 %v1891_v1  ;;  %v1907_v17 = vld [vmem:[#allocation3 + $0xa0] sm:$0xff]   ;;  %v1908_v18 = vld [vmem:[#allocation3 + $0x28] sm:$0xff]   ;;  %v1910_v20 = vld [vmem:[#allocation3 + $0x30] sm:$0xff]  }
  0x2d   :  { %1793 = vmatprep.subr.bf16.mxu0 %v1892_v2  ;;  %1871 = vmatprep.subr.bf16.mxu1 %v1892_v2  ;;  %v1909_v19 = vld [vmem:[#allocation3 + $0xa8] sm:$0xff]   ;;  %v1911_v21 = vld [vmem:[#allocation3 + $0xb0] sm:$0xff]   ;;  %v1912_v22 = vld [vmem:[#allocation3 + $0x38] sm:$0xff]  }
  0x2e   :  { %v1913_v23 = vld [vmem:[#allocation3 + $0xb8] sm:$0xff]   ;;  %v1914_v24 = vld [vmem:[#allocation3 + $0x40] sm:$0xff]   ;;  %v1916_v26 = vld [vmem:[#allocation3 + $0x48] sm:$0xff]  }
  0x2f   :  { %v1915_v25 = vld [vmem:[#allocation3 + $0xc0] sm:$0xff]   ;;  %v1917_v27 = vld [vmem:[#allocation3 + $0xc8] sm:$0xff]   ;;  %v1918_v28 = vld [vmem:[#allocation3 + $0x50] sm:$0xff]  }
  0x30   :  { %1794 = vmatpush3.bf16.msra.mxu0 %v1892_v2  ;;  %1879 = vmatpush3.bf16.msra.mxu1 %v1892_v2  ;;  %v1919_v29 = vld [vmem:[#allocation3 + $0xd0] sm:$0xff]   ;;  %v1920_v30 = vld [vmem:[#allocation3 + $0x58] sm:$0xff]   ;;  %v1922_v32 = vld [vmem:[#allocation3 + $0x60] sm:$0xff]  }
  0x31   :  { %1795 = vmatprep.subr.bf16.mxu0 %v1893_v3  ;;  %1872 = vmatprep.subr.bf16.mxu1 %v1893_v3  ;;  %v1921_v31 = vld [vmem:[#allocation3 + $0xd8] sm:$0xff]   ;;  %v1923_v33 = vld [vmem:[#allocation3 + $0xe0] sm:$0xff]   ;;  %v1924_v34 = vld [vmem:[#allocation3 + $0x68] sm:$0xff]  }
  0x32   :  { %v1925_v35 = vld [vmem:[#allocation3 + $0xe8] sm:$0xff]   ;;  %v1926_v36 = vld [vmem:[#allocation3 + $0x70] sm:$0xff]   ;;  %v1928_v38 = vld [vmem:[#allocation3 + $0x78] sm:$0xff]  }
  0x33   :  { %v1927_v37 = vld [vmem:[#allocation3 + $0xf0] sm:$0xff]   ;;  %v1929_v39 = vld [vmem:[#allocation3 + $0xf8] sm:$0xff]   ;;  %v2060_v41 = vld [vmem:[%s2143_s2] ss:$0 sm:$0xff]  ;;  %s2006_s2 = smov [#allocation8]  }
  0x34   :  { %1796 = vmatpush3.bf16.msra.mxu0 %v1893_v3  ;;  %1880 = vmatpush3.bf16.msra.mxu1 %v1893_v3  ;;  %s1376_s11 = sshll.u32 %s2006_s2, 4  ;;  %s1377_s11 = int_to_ptr.vmem [resolvable:$true] %s1376_s11 }
  0x35   :  { %1797 = vmatprep.subr.bf16.mxu0 %v1894_v6  ;;  %1873 = vmatprep.subr.bf16.mxu1 %v1894_v6  ;;  %s1974_s12 = scalar_lea.vmem %s1377_s11, 4096  ;;  %p1979_p3 = scmp.lt.s32.totalorder %s1377_s11, %s1377_s11 }
  0x36   :  { %p1975_p2 = scmp.ne.s32.totalorder %s1377_s11, %s1974_s12  ;;  %p1980_p4 = scmp.lt.s32.totalorder %s1974_s12, %s1974_s12 }
  0x38   :  { %1798 = vmatpush3.bf16.msra.mxu0 %v1894_v6  ;;  %1881 = vmatpush3.bf16.msra.mxu1 %v1894_v6  ;;  %p1981_p5 = por %p1980_p4, %p1979_p3 }
  0x39   :  { %1799 = vmatprep.subr.bf16.mxu0 %v1895_v7  ;;  %1874 = vmatprep.subr.bf16.mxu1 %v1895_v7 }
  0x3a   :  { %p1982_p6 = pnand %p1981_p5, %p1975_p2 }
  0x3c   :  { %1800 = vmatpush3.bf16.msra.mxu0 %v1895_v7  ;;  %1882 = vmatpush3.bf16.msra.mxu1 %v1895_v7 }
  0x3d   :  { %1801 = vmatprep.subr.bf16.mxu0 %v1896_v8  ;;  %1875 = vmatprep.subr.bf16.mxu1 %v1896_v8 }
  0x40   :  { %1802 = vmatpush3.bf16.msra.mxu0 %v1896_v8  ;;  %1883 = vmatpush3.bf16.msra.mxu1 %v1896_v8 }
  0x41   :  { %1803 = vmatprep.subr.bf16.mxu0 %v1897_v9  ;;  %1876 = vmatprep.subr.bf16.mxu1 %v1897_v9 }
  0x44   :  { %1804 = vmatpush3.bf16.msra.mxu0 %v1897_v9  ;;  %1884 = vmatpush3.bf16.msra.mxu1 %v1897_v9 }
  0x47   :  { %1806 = vmatmul.mubr.bf16.vlgmr.msra.gmra.mrb[0].mxu0 %v1900_v10  ;;  %1838 = vmatmul.mubr.bf16.vlgmr.msra.gmra.mrb[0].mxu1 %v1901_v11 }
  0x48   :  { %1809 = vmatprep.mubr.bf16.mxu0 %v1902_v12  ;;  %1841 = vmatprep.mubr.bf16.mxu1 %v1903_v13 }
  0x4f   :  { %1810 = vmatmul.mubr.bf16.gmra.mrb[4].mxu0 %v1904_v14  ;;  %1842 = vmatmul.mubr.bf16.gmra.mrb[4].mxu1 %v1905_v15 }
  0x50   :  { %1813 = vmatprep.mubr.bf16.mxu0 %v1906_v16  ;;  %1845 = vmatprep.mubr.bf16.mxu1 %v1907_v17 }
  0x57   :  { %1814 = vmatmul.mubr.bf16.gmra.mrb[8].mxu0 %v1908_v18  ;;  %1846 = vmatmul.mubr.bf16.gmra.mrb[8].mxu1 %v1909_v19 }
  0x58   :  { %1817 = vmatprep.mubr.bf16.mxu0 %v1910_v20  ;;  %1849 = vmatprep.mubr.bf16.mxu1 %v1911_v21 }
  0x5f   :  { %1818 = vmatmul.mubr.bf16.gmra.mrb[12].mxu0 %v1912_v22  ;;  %1850 = vmatmul.mubr.bf16.gmra.mrb[12].mxu1 %v1913_v23 }
  0x60   :  { %1821 = vmatprep.mubr.bf16.mxu0 %v1914_v24  ;;  %1853 = vmatprep.mubr.bf16.mxu1 %v1915_v25 }
  0x67   :  { %1822 = vmatmul.mubr.bf16.gmra.mrb[16].mxu0 %v1916_v26  ;;  %1854 = vmatmul.mubr.bf16.gmra.mrb[16].mxu1 %v1917_v27 }
  0x68   :  { %1825 = vmatprep.mubr.bf16.mxu0 %v1918_v28  ;;  %1857 = vmatprep.mubr.bf16.mxu1 %v1919_v29 }
  0x6f   :  { %1826 = vmatmul.mubr.bf16.gmra.mrb[20].mxu0 %v1920_v30  ;;  %1858 = vmatmul.mubr.bf16.gmra.mrb[20].mxu1 %v1921_v31 }
  0x70   :  { %1829 = vmatprep.mubr.bf16.mxu0 %v1922_v32  ;;  %1861 = vmatprep.mubr.bf16.mxu1 %v1923_v33 }
  0x77   :  { %1830 = vmatmul.mubr.bf16.gmra.mrb[24].mxu0 %v1924_v34  ;;  %1862 = vmatmul.mubr.bf16.gmra.mrb[24].mxu1 %v1925_v35 }
  0x78   :  { %1833 = vmatprep.mubr.bf16.mxu0 %v1926_v36  ;;  %1865 = vmatprep.mubr.bf16.mxu1 %v1927_v37 }
  0x7f   :  { %1834 = vmatmul.mubr.bf16.gmra.mrb[28].mxu0 %v1928_v38  ;;  %1866 = vmatmul.mubr.bf16.gmra.mrb[28].mxu1 %v1929_v39 }
 0x11a   :  { %v1807_v40 = vpop.f32.mrb[0].mxu0  ;;  %v1839_v42 = vpop.f32.mrb[0].mxu1 }
 0x11b   :  { %v530_v43 = vpop.f32.mrb[1].mxu0  ;;  %v658_v44 = vpop.f32.mrb[1].mxu1  ;;  %v989_v47 = vadd.f32 %v1807_v40, %v2060_v41  ;;  %v1021_v48 = vadd.f32 %v1839_v42, %v2060_v41 }
 0x11c   :  { %v1808_v45 = vpop.f32.mrb[2].mxu0  ;;  %v1840_v46 = vpop.f32.mrb[2].mxu1  ;;  %v987_v53 = vadd.f32 %v2060_v41, %v530_v43  ;;  %v1019_v54 = vadd.f32 %v2060_v41, %v658_v44 }
 0x11d   :  { %v990_v49 = vadd.f32 %v1808_v45, %v2060_v41  ;;  %v1022_v50 = vadd.f32 %v1840_v46, %v2060_v41  ;;  %v533_v51 = vpop.f32.mrb[3].mxu0  ;;  %v661_v52 = vpop.f32.mrb[3].mxu1 }
 0x11e   :  { %v988_v55 = vadd.f32 %v2060_v41, %v533_v51  ;;  %v1020_v56 = vadd.f32 %v2060_v41, %v661_v52 }
 0x11f   :  { %v1566_v57 = vpack.c.bf16 %v990_v49, %v989_v47  ;;  %v1646_v58 = vpack.c.bf16 %v1022_v50, %v1021_v48 }
 0x120   :  { %v1561_v59 = vpack.c.bf16 %v988_v55, %v987_v53  ;;  %v1641_v60 = vpack.c.bf16 %v1020_v56, %v1019_v54 }
 0x121   :  { %1718 = vst [vmem:[#allocation8 + $0x8] sm:$0xff] %v1566_v57   ;;  %1734 = vst [vmem:[#allocation8 + $0x88] sm:$0xff] %v1646_v58  }
 0x122   :  { %1562 = vst [vmem:[#allocation8] sm:$0xff] %v1561_v59   ;;  %1733 = vst [vmem:[#allocation8 + $0x80] sm:$0xff] %v1641_v60   ;;  %v1811_v61 = vpop.f32.mrb[4].mxu0  ;;  %v1843_v62 = vpop.f32.mrb[4].mxu1 }
 0x123   :  { %v546_v63 = vpop.f32.mrb[5].mxu0  ;;  %v674_v0 = vpop.f32.mrb[5].mxu1  ;;  %v993_v3 = vadd.f32 %v1811_v61, %v2060_v41  ;;  %v1025_v4 = vadd.f32 %v1843_v62, %v2060_v41 }
 0x124   :  { %v1812_v1 = vpop.f32.mrb[6].mxu0  ;;  %v1844_v2 = vpop.f32.mrb[6].mxu1  ;;  %v991_v9 = vadd.f32 %v2060_v41, %v546_v63  ;;  %v1023_v10 = vadd.f32 %v2060_v41, %v674_v0 }
 0x125   :  { %v994_v5 = vadd.f32 %v1812_v1, %v2060_v41  ;;  %v1026_v6 = vadd.f32 %v1844_v2, %v2060_v41  ;;  %v549_v7 = vpop.f32.mrb[7].mxu0  ;;  %v677_v8 = vpop.f32.mrb[7].mxu1 }
 0x126   :  { %v992_v11 = vadd.f32 %v2060_v41, %v549_v7  ;;  %v1024_v12 = vadd.f32 %v2060_v41, %v677_v8 }
 0x127   :  { %v1576_v13 = vpack.c.bf16 %v994_v5, %v993_v3  ;;  %v1656_v14 = vpack.c.bf16 %v1026_v6, %v1025_v4 }
 0x128   :  { %v1571_v15 = vpack.c.bf16 %v992_v11, %v991_v9  ;;  %v1651_v16 = vpack.c.bf16 %v1024_v12, %v1023_v10 }
 0x129   :  { %1720 = vst [vmem:[#allocation8 + $0x18] sm:$0xff] %v1576_v13   ;;  %1736 = vst [vmem:[#allocation8 + $0x98] sm:$0xff] %v1656_v14  }
 0x12a   :  { %1719 = vst [vmem:[#allocation8 + $0x10] sm:$0xff] %v1571_v15   ;;  %1735 = vst [vmem:[#allocation8 + $0x90] sm:$0xff] %v1651_v16   ;;  %v1815_v17 = vpop.f32.mrb[8].mxu0  ;;  %v1847_v18 = vpop.f32.mrb[8].mxu1 }
 0x12b   :  { %v562_v19 = vpop.f32.mrb[9].mxu0  ;;  %v690_v20 = vpop.f32.mrb[9].mxu1  ;;  %v997_v23 = vadd.f32 %v1815_v17, %v2060_v41  ;;  %v1029_v24 = vadd.f32 %v1847_v18, %v2060_v41 }
 0x12c   :  { %v1816_v21 = vpop.f32.mrb[10].mxu0  ;;  %v1848_v22 = vpop.f32.mrb[10].mxu1  ;;  %v995_v29 = vadd.f32 %v2060_v41, %v562_v19  ;;  %v1027_v30 = vadd.f32 %v2060_v41, %v690_v20 }
 0x12d   :  { %v998_v25 = vadd.f32 %v1816_v21, %v2060_v41  ;;  %v1030_v26 = vadd.f32 %v1848_v22, %v2060_v41  ;;  %v565_v27 = vpop.f32.mrb[11].mxu0  ;;  %v693_v28 = vpop.f32.mrb[11].mxu1 }
 0x12e   :  { %v996_v31 = vadd.f32 %v2060_v41, %v565_v27  ;;  %v1028_v32 = vadd.f32 %v2060_v41, %v693_v28 }
 0x12f   :  { %v1586_v33 = vpack.c.bf16 %v998_v25, %v997_v23  ;;  %v1666_v34 = vpack.c.bf16 %v1030_v26, %v1029_v24 }
 0x130   :  { %v1581_v35 = vpack.c.bf16 %v996_v31, %v995_v29  ;;  %v1661_v36 = vpack.c.bf16 %v1028_v32, %v1027_v30 }
 0x131   :  { %1722 = vst [vmem:[#allocation8 + $0x28] sm:$0xff] %v1586_v33   ;;  %1738 = vst [vmem:[#allocation8 + $0xa8] sm:$0xff] %v1666_v34  }
 0x132   :  { %1721 = vst [vmem:[#allocation8 + $0x20] sm:$0xff] %v1581_v35   ;;  %1737 = vst [vmem:[#allocation8 + $0xa0] sm:$0xff] %v1661_v36   ;;  %v1819_v37 = vpop.f32.mrb[12].mxu0  ;;  %v1851_v38 = vpop.f32.mrb[12].mxu1 }
 0x133   :  { %v578_v39 = vpop.f32.mrb[13].mxu0  ;;  %v706_v40 = vpop.f32.mrb[13].mxu1  ;;  %v1001_v44 = vadd.f32 %v1819_v37, %v2060_v41  ;;  %v1033_v45 = vadd.f32 %v1851_v38, %v2060_v41 }
 0x134   :  { %v1820_v42 = vpop.f32.mrb[14].mxu0  ;;  %v1852_v43 = vpop.f32.mrb[14].mxu1  ;;  %v999_v50 = vadd.f32 %v2060_v41, %v578_v39  ;;  %v1031_v51 = vadd.f32 %v2060_v41, %v706_v40 }
 0x135   :  { %v1002_v46 = vadd.f32 %v1820_v42, %v2060_v41  ;;  %v1034_v47 = vadd.f32 %v1852_v43, %v2060_v41  ;;  %v581_v48 = vpop.f32.mrb[15].mxu0  ;;  %v709_v49 = vpop.f32.mrb[15].mxu1 }
 0x136   :  { %v1000_v52 = vadd.f32 %v2060_v41, %v581_v48  ;;  %v1032_v53 = vadd.f32 %v2060_v41, %v709_v49 }
 0x137   :  { %v1596_v54 = vpack.c.bf16 %v1002_v46, %v1001_v44  ;;  %v1676_v55 = vpack.c.bf16 %v1034_v47, %v1033_v45 }
 0x138   :  { %v1591_v56 = vpack.c.bf16 %v1000_v52, %v999_v50  ;;  %v1671_v57 = vpack.c.bf16 %v1032_v53, %v1031_v51 }
 0x139   :  { %1724 = vst [vmem:[#allocation8 + $0x38] sm:$0xff] %v1596_v54   ;;  %1740 = vst [vmem:[#allocation8 + $0xb8] sm:$0xff] %v1676_v55  }
 0x13a   :  { %1723 = vst [vmem:[#allocation8 + $0x30] sm:$0xff] %v1591_v56   ;;  %1739 = vst [vmem:[#allocation8 + $0xb0] sm:$0xff] %v1671_v57   ;;  %v1823_v58 = vpop.f32.mrb[16].mxu0  ;;  %v1855_v59 = vpop.f32.mrb[16].mxu1 }
 0x13b   :  { %v594_v60 = vpop.f32.mrb[17].mxu0  ;;  %v722_v61 = vpop.f32.mrb[17].mxu1  ;;  %v1005_v0 = vadd.f32 %v1823_v58, %v2060_v41  ;;  %v1037_v1 = vadd.f32 %v1855_v59, %v2060_v41 }
 0x13c   :  { %v1824_v62 = vpop.f32.mrb[18].mxu0  ;;  %v1856_v63 = vpop.f32.mrb[18].mxu1  ;;  %v1003_v6 = vadd.f32 %v2060_v41, %v594_v60  ;;  %v1035_v7 = vadd.f32 %v2060_v41, %v722_v61 }
 0x13d   :  { %v1006_v2 = vadd.f32 %v1824_v62, %v2060_v41  ;;  %v1038_v3 = vadd.f32 %v1856_v63, %v2060_v41  ;;  %v597_v4 = vpop.f32.mrb[19].mxu0  ;;  %v725_v5 = vpop.f32.mrb[19].mxu1 }
 0x13e   :  { %v1004_v8 = vadd.f32 %v2060_v41, %v597_v4  ;;  %v1036_v9 = vadd.f32 %v2060_v41, %v725_v5 }
 0x13f   :  { %v1606_v10 = vpack.c.bf16 %v1006_v2, %v1005_v0  ;;  %v1686_v11 = vpack.c.bf16 %v1038_v3, %v1037_v1 }
 0x140   :  { %v1601_v12 = vpack.c.bf16 %v1004_v8, %v1003_v6  ;;  %v1681_v13 = vpack.c.bf16 %v1036_v9, %v1035_v7 }
 0x141   :  { %1726 = vst [vmem:[#allocation8 + $0x48] sm:$0xff] %v1606_v10   ;;  %1742 = vst [vmem:[#allocation8 + $0xc8] sm:$0xff] %v1686_v11  }
 0x142   :  { %1725 = vst [vmem:[#allocation8 + $0x40] sm:$0xff] %v1601_v12   ;;  %1741 = vst [vmem:[#allocation8 + $0xc0] sm:$0xff] %v1681_v13   ;;  %v1827_v14 = vpop.f32.mrb[20].mxu0  ;;  %v1859_v15 = vpop.f32.mrb[20].mxu1 }
 0x143   :  { %v610_v16 = vpop.f32.mrb[21].mxu0  ;;  %v738_v17 = vpop.f32.mrb[21].mxu1  ;;  %v1009_v20 = vadd.f32 %v1827_v14, %v2060_v41  ;;  %v1041_v21 = vadd.f32 %v1859_v15, %v2060_v41 }
 0x144   :  { %v1828_v18 = vpop.f32.mrb[22].mxu0  ;;  %v1860_v19 = vpop.f32.mrb[22].mxu1  ;;  %v1007_v26 = vadd.f32 %v2060_v41, %v610_v16  ;;  %v1039_v27 = vadd.f32 %v2060_v41, %v738_v17 }
 0x145   :  { %v1010_v22 = vadd.f32 %v1828_v18, %v2060_v41  ;;  %v1042_v23 = vadd.f32 %v1860_v19, %v2060_v41  ;;  %v613_v24 = vpop.f32.mrb[23].mxu0  ;;  %v741_v25 = vpop.f32.mrb[23].mxu1 }
 0x146   :  { %v1008_v28 = vadd.f32 %v2060_v41, %v613_v24  ;;  %v1040_v29 = vadd.f32 %v2060_v41, %v741_v25 }
 0x147   :  { %v1616_v30 = vpack.c.bf16 %v1010_v22, %v1009_v20  ;;  %v1696_v31 = vpack.c.bf16 %v1042_v23, %v1041_v21 }
 0x148   :  { %v1611_v32 = vpack.c.bf16 %v1008_v28, %v1007_v26  ;;  %v1691_v33 = vpack.c.bf16 %v1040_v29, %v1039_v27 }
 0x149   :  { %1728 = vst [vmem:[#allocation8 + $0x58] sm:$0xff] %v1616_v30   ;;  %1744 = vst [vmem:[#allocation8 + $0xd8] sm:$0xff] %v1696_v31  }
 0x14a   :  { %1727 = vst [vmem:[#allocation8 + $0x50] sm:$0xff] %v1611_v32   ;;  %1743 = vst [vmem:[#allocation8 + $0xd0] sm:$0xff] %v1691_v33   ;;  %v1831_v34 = vpop.f32.mrb[24].mxu0  ;;  %v1863_v35 = vpop.f32.mrb[24].mxu1 }
 0x14b   :  { %v626_v36 = vpop.f32.mrb[25].mxu0  ;;  %v754_v37 = vpop.f32.mrb[25].mxu1  ;;  %v1013_v40 = vadd.f32 %v1831_v34, %v2060_v41  ;;  %v1045_v42 = vadd.f32 %v1863_v35, %v2060_v41 }
 0x14c   :  { %v1832_v38 = vpop.f32.mrb[26].mxu0  ;;  %v1864_v39 = vpop.f32.mrb[26].mxu1  ;;  %v1011_v47 = vadd.f32 %v2060_v41, %v626_v36  ;;  %v1043_v48 = vadd.f32 %v2060_v41, %v754_v37 }
 0x14d   :  { %v1014_v43 = vadd.f32 %v1832_v38, %v2060_v41  ;;  %v1046_v44 = vadd.f32 %v1864_v39, %v2060_v41  ;;  %v629_v45 = vpop.f32.mrb[27].mxu0  ;;  %v757_v46 = vpop.f32.mrb[27].mxu1 }
 0x14e   :  { %v1012_v49 = vadd.f32 %v2060_v41, %v629_v45  ;;  %v1044_v50 = vadd.f32 %v2060_v41, %v757_v46 }
 0x14f   :  { %v1626_v51 = vpack.c.bf16 %v1014_v43, %v1013_v40  ;;  %v1706_v52 = vpack.c.bf16 %v1046_v44, %v1045_v42 }
 0x150   :  { %v1621_v53 = vpack.c.bf16 %v1012_v49, %v1011_v47  ;;  %v1701_v54 = vpack.c.bf16 %v1044_v50, %v1043_v48 }
 0x151   :  { %1730 = vst [vmem:[#allocation8 + $0x68] sm:$0xff] %v1626_v51   ;;  %1746 = vst [vmem:[#allocation8 + $0xe8] sm:$0xff] %v1706_v52  }
 0x152   :  { %1729 = vst [vmem:[#allocation8 + $0x60] sm:$0xff] %v1621_v53   ;;  %1745 = vst [vmem:[#allocation8 + $0xe0] sm:$0xff] %v1701_v54   ;;  %v1835_v55 = vpop.f32.mrb[28].mxu0  ;;  %v1867_v56 = vpop.f32.mrb[28].mxu1 }
 0x153   :  { %v642_v57 = vpop.f32.mrb[29].mxu0  ;;  %v770_v58 = vpop.f32.mrb[29].mxu1  ;;  %v1017_v61 = vadd.f32 %v1835_v55, %v2060_v41  ;;  %v1049_v62 = vadd.f32 %v1867_v56, %v2060_v41 }
 0x154   :  { %v1836_v59 = vpop.f32.mrb[30].mxu0  ;;  %v1868_v60 = vpop.f32.mrb[30].mxu1  ;;  %v1015_v3 = vadd.f32 %v2060_v41, %v642_v57  ;;  %v1047_v4 = vadd.f32 %v2060_v41, %v770_v58 }
 0x155   :  { %v1018_v63 = vadd.f32 %v1836_v59, %v2060_v41  ;;  %v1050_v0 = vadd.f32 %v1868_v60, %v2060_v41  ;;  %v645_v1 = vpop.f32.mrb[31].mxu0  ;;  %v773_v2 = vpop.f32.mrb[31].mxu1 }
 0x156   :  { %v1016_v5 = vadd.f32 %v2060_v41, %v645_v1  ;;  %v1048_v6 = vadd.f32 %v2060_v41, %v773_v2 }
 0x157   :  { %v1636_v7 = vpack.c.bf16 %v1018_v63, %v1017_v61  ;;  %v1716_v8 = vpack.c.bf16 %v1050_v0, %v1049_v62 }
 0x158   :  { %v1631_v9 = vpack.c.bf16 %v1016_v5, %v1015_v3  ;;  %v1711_v10 = vpack.c.bf16 %v1048_v6, %v1047_v4 }
 0x159   :  { %1732 = vst [vmem:[#allocation8 + $0x78] sm:$0xff] %v1636_v7   ;;  %1748 = vst [vmem:[#allocation8 + $0xf8] sm:$0xff] %v1716_v8  }
 0x15a   :  { %1731 = vst [vmem:[#allocation8 + $0x70] sm:$0xff] %v1631_v9   ;;  %1747 = vst [vmem:[#allocation8 + $0xf0] sm:$0xff] %v1711_v10  }
 0x15b   :  { %1985 = shalt.err (!%p1982_p6)
}
 0x15c   :  { %s1986_s15 = scalar_lea.hbm %s2144_s3, 4096 }
 0x15d   :  { %p1987_p7 = scmp.ne.s32.totalorder %s2144_s3, %s1986_s15  ;;  %p1990_p8 = scmp.lt.u32.totalorder %s1986_s15, %s2144_s3 }
 0x15f   :  { %p1992_p9 = pnand %p1990_p8, %p1987_p7 }
 0x161   :  { %1995 = shalt.err (!%p1992_p9)
}
 0x162   :  { %1382 = dma.vmem_to_hbm [thread:$0]  %s1377_s11, 4096, %s2144_s3, [#allocation5], %s2003_s22, %s2003_s22, %s2004_s23  }
 0x163   :  { %2000 = dma.done.wait [#allocation5], 4096  }
 0x164   :  { %2001 = vsyncadd [#allocation5], 4294963200 }
 0x165   :  { %1386 = vsyncpa [#allocation4], 1 }
 0x166   :  { %1387 = vsyncpa [#allocation7], 1 }
 0x167   :  { %1388 = vsyncpa [#allocation5], 1 }

</bundles_post_ra>
